<compile_context>
chip_gen: v6e
topology: v6e:2x2x1
jax: 0.10.0
libtpu: 0.0.40
codegen_flags: <defaults>
</compile_context>

<pallas_src>
import functools
import math

import numpy as np
import jax
import jax.numpy as jnp
from jax.experimental import pallas as pl
from jax.experimental.pallas import tpu as pltpu

_EPS_GEO = 1e-7                 # GeodesicLoss eps
_EPS_NORM = 1e-12               # F.normalize eps (clamp on the norm)
_EPS_NORM_SQ = _EPS_NORM * _EPS_NORM
_PAD_LOGIT = -30.0              # padding objectness logit: never passes the threshold


def _round_up(x, m):
    return ((x + m - 1) // m) * m


def _rot6d_components(d6):
    """6D -> rotation-matrix rows, vectorized over dense (row_tile, 128) tiles.

    d6: (6, TR, 128).  Returns ((b1x,b1y,b1z),(b2x,b2y,b2z),(b3x,b3y,b3z)),
    each component shaped (TR, 128).  Pure VPU/EUP elementwise work.
    """
    ax, ay, az = d6[0], d6[1], d6[2]
    cx, cy, cz = d6[3], d6[4], d6[5]
    # F.normalize: x / max(||x||, eps)  ==  x * rsqrt(max(||x||^2, eps^2))
    inv1 = jax.lax.rsqrt(jnp.maximum(ax * ax + ay * ay + az * az, _EPS_NORM_SQ))
    b1x, b1y, b1z = ax * inv1, ay * inv1, az * inv1
    dot = b1x * cx + b1y * cy + b1z * cz
    ux, uy, uz = cx - dot * b1x, cy - dot * b1y, cz - dot * b1z
    inv2 = jax.lax.rsqrt(jnp.maximum(ux * ux + uy * uy + uz * uz, _EPS_NORM_SQ))
    b2x, b2y, b2z = ux * inv2, uy * inv2, uz * inv2
    b3x = b1y * b2z - b1z * b2y
    b3y = b1z * b2x - b1x * b2z
    b3z = b1x * b2y - b1y * b2x
    return (b1x, b1y, b1z), (b2x, b2y, b2z), (b3x, b3y, b3z)


def _rotation_loss_kernel(prot_ref, trot_ref, pobj_ref, out_ref, acc_ref, *,
                          logit_thres, reduce_axis):
    """prot_ref/trot_ref: (6, TR, 128); pobj_ref: (TR, 128).

    acc_ref: (8, 128) VMEM scratch; rows 0..2 hold lane-wise [sum_l2, sum_theta, count].
    out_ref: (1, 8, 128) per-core output block, written once at the last reduction step.
    """
    r = pl.program_id(reduce_axis)

    @pl.when(r == 0)
    def _init():
        acc_ref[...] = jnp.zeros_like(acc_ref)

    pobj = pobj_ref[...]                                            # (TR, 128)

    # Tile-skip: if no prediction in this tile passes the threshold (including pure
    # padding tiles), skip the whole EUP-heavy pipeline.
    @pl.when(jnp.max(pobj) > logit_thres)
    def _compute():
        # valid_predictions (nc == 2): sigmoid(pobj) > conf_thres  <=>  pobj > logit(thres)
        mask = (pobj > logit_thres).astype(jnp.float32)             # (TR, 128)

        # (sigmoid(x) - 0.5) * 2  ==  tanh(x / 2): one EUP op per element.
        p6 = jnp.tanh(prot_ref[...] * 0.5)                          # (6, TR, 128)
        t6 = (trot_ref[...] - 0.5) * 2.0

        P = _rot6d_components(p6)
        T = _rot6d_components(t6)

        # per-prediction: sum of row-wise L2 norms of (p_rot - t_rot),
        # and trace(p_rot @ t_rot^T) = sum of elementwise products.
        l2 = jnp.zeros_like(mask)
        trace = jnp.zeros_like(mask)
        for k in range(3):
            dx = P[k][0] - T[k][0]
            dy = P[k][1] - T[k][1]
            dz = P[k][2] - T[k][2]
            l2 = l2 + jnp.sqrt(dx * dx + dy * dy + dz * dz)
            trace = trace + P[k][0] * T[k][0] + P[k][1] * T[k][1] + P[k][2] * T[k][2]

        cos = jnp.clip((trace - 1.0) * 0.5, -1.0 + _EPS_GEO, 1.0 - _EPS_GEO)
        # acos(c) == atan2(sqrt(1 - c^2), c) on the clamped open interval (-1, 1).
        theta = jnp.arctan2(jnp.sqrt(jnp.maximum(1.0 - cos * cos, 0.0)), cos)

        # Sublane-reduce to per-lane partials; cross-lane reduce left to the wrapper.
        acc_ref[0:1, :] += jnp.sum(mask * l2, axis=0, keepdims=True)
        acc_ref[1:2, :] += jnp.sum(mask * theta, axis=0, keepdims=True)
        acc_ref[2:3, :] += jnp.sum(mask, axis=0, keepdims=True)

    @pl.when(r == pl.num_programs(reduce_axis) - 1)
    def _finalize():
        out_ref[...] = acc_ref[...][None]                            # single unmasked store


def rotation_loss(prot, trot, pobj, pcls=None, *, conf_thres=0.4,
                  num_cores=1, row_tile=None, max_row_tile=256,
                  vmem_limit_bytes=48 * 1024 * 1024):
    """Pallas implementation of RotationLoss.forward (nc=2).

    prot, trot: (N, 6); pobj: (N, 1); pcls unused in the nc == 2 branch.
    Returns (ll2, lgeo, heads, bodies).  The PyTorch `return False` branch
    (heads == 0) is a Python-level decision left to the caller; `heads` carries the
    exact valid-prediction count needed for that check.

    num_cores: leave at 1 on v5e/v6e (single TensorCore).  On v7x pass num_cores=2 to
    shard the reduction across both TensorCores via CORE_PARALLEL.
    """
    del pcls  # unused in the nc == 2 branch
    N = prot.shape[0]
    R = int(pl.cdiv(max(N, 1), 128))              # 128-lane rows of predictions
    if row_tile is None:
        # Single grid step for small N (the common loss-call case); cap keeps the
        # per-step VMEM footprint (~13 KiB/row double-buffered + temps) comfortable.
        row_tile = min(_round_up(R, 8), max_row_tile)
    else:
        row_tile = _round_up(row_tile, 8)
    chunk = row_tile * num_cores
    Rp = _round_up(R, chunk)                      # rows padded to cores * tile
    bpc = Rp // chunk                             # row-blocks per core
    Np = Rp * 128

    # Tail-pad only (no full-size zero buffer + scatter).
    prot_t = jnp.pad(prot.T.astype(jnp.float32), ((0, 0), (0, Np - N))).reshape(6, Rp, 128)
    trot_t = jnp.pad(trot.T.astype(jnp.float32), ((0, 0), (0, Np - N))).reshape(6, Rp, 128)
    pobj_t = jnp.pad(pobj.reshape(-1).astype(jnp.float32), (0, Np - N),
                     constant_values=_PAD_LOGIT).reshape(Rp, 128)

    logit_thres = float(math.log(conf_thres / (1.0 - conf_thres)))

    if num_cores == 1:
        grid = (bpc,)
        reduce_axis = 0
        rot_spec = pl.BlockSpec((6, row_tile, 128), lambda r: (0, r, 0))
        obj_spec = pl.BlockSpec((row_tile, 128), lambda r: (r, 0))
        out_spec = pl.BlockSpec((1, 8, 128), lambda r: (0, 0, 0))
        semantics = ("arbitrary",)
    else:
        grid = (num_cores, bpc)
        reduce_axis = 1
        rot_spec = pl.BlockSpec((6, row_tile, 128), lambda c, r: (0, c * bpc + r, 0))
        obj_spec = pl.BlockSpec((row_tile, 128), lambda c, r: (c * bpc + r, 0))
        out_spec = pl.BlockSpec((1, 8, 128), lambda c, r: (c, 0, 0))
        # v7x: make the 2-TC split explicit; "parallel" alone does not guarantee it.
        semantics = (pltpu.CORE_PARALLEL, pltpu.ARBITRARY)

    kernel = functools.partial(_rotation_loss_kernel,
                               logit_thres=logit_thres, reduce_axis=reduce_axis)

    partials = pl.pallas_call(
        kernel,
        out_shape=jax.ShapeDtypeStruct((num_cores, 8, 128), jnp.float32),
        grid_spec=pltpu.PrefetchScalarGridSpec(
            num_scalar_prefetch=0,
            grid=grid,
            in_specs=[rot_spec, rot_spec, obj_spec],
            out_specs=out_spec,
            scratch_shapes=[pltpu.VMEM((8, 128), jnp.float32)],
        ),
        compiler_params=pltpu.CompilerParams(
            dimension_semantics=semantics,
            vmem_limit_bytes=vmem_limit_bytes),
    )(prot_t, trot_t, pobj_t)

    # Final tiny reduction: sum over cores and lanes.
    sums = jnp.sum(partials[:, :3, :], axis=(0, 2))   # [sum_l2, sum_theta, count]
    # f32 count sum is exact up to ~2^24 valid predictions per lane; round is safe.
    heads = jnp.round(sums[2]).astype(jnp.int32)
    bodies = jnp.int32(0)                             # nc == 2 branch always returns 0 bodies
    denom = jnp.maximum(heads, 1).astype(jnp.float32)
    ll2 = sums[0] / (3.0 * denom)                     # mean over (M valid) x (3 rows) norms
    lgeo = sums[1] / denom                            # mean theta over valid predictions
    return ll2, lgeo, heads, bodies


def _reference_numpy(prot, trot, pobj, conf_thres=0.4):
    """Direct translation of the PyTorch forward (nc=2) for verification."""
    prot = np.asarray(prot, np.float64)
    trot = np.asarray(trot, np.float64)
    pobj = np.asarray(pobj, np.float64)
    sig = lambda x: 1.0 / (1.0 + np.exp(-x))
    left = (sig(pobj) > conf_thres).reshape(-1)
    heads = int(left.sum())
    if heads == 0:
        return None
    p6 = (sig(prot[left]) - 0.5) * 2.0
    t6 = (trot[left] - 0.5) * 2.0

    def r6d(d6):
        a1, a2 = d6[:, :3], d6[:, 3:]
        b1 = a1 / np.maximum(np.linalg.norm(a1, axis=-1, keepdims=True), 1e-12)
        u2 = a2 - np.sum(b1 * a2, axis=-1, keepdims=True) * b1
        b2 = u2 / np.maximum(np.linalg.norm(u2, axis=-1, keepdims=True), 1e-12)
        b3 = np.cross(b1, b2)
        return np.stack([b1, b2, b3], axis=-2)

    pr, tr = r6d(p6), r6d(t6)
    ll2 = float(np.mean(np.linalg.norm(pr - tr, axis=-1)))
    m = pr @ np.transpose(tr, (0, 2, 1))
    cos = (m[:, 0, 0] + m[:, 1, 1] + m[:, 2, 2] - 1.0) / 2.0
    theta = np.arccos(np.clip(cos, -1.0 + 1e-7, 1.0 - 1e-7))
    return ll2, float(theta.mean()), heads, 0


if __name__ == "__main__":
    key = jax.random.PRNGKey(0)
    k1, k2, k3, k4 = jax.random.split(key, 4)
    N = 8
    prot = jax.random.normal(k1, (N, 6), dtype=jnp.float32)          # predicted 6D logits
    trot = jax.random.uniform(k2, (N, 6), dtype=jnp.float32)         # target 6D in [0, 1]
    pobj = jax.random.normal(k3, (N, 1), dtype=jnp.float32) + 0.5    # objectness logits
    pcls = jax.random.normal(k4, (N, 2), dtype=jnp.float32)          # class logits (unused, nc=2)

    ll2, lgeo, heads, bodies = jax.block_until_ready(rotation_loss(prot, trot, pobj, pcls))

    ref = _reference_numpy(prot, trot, pobj)
    assert ref is not None, "test inputs produced no valid predictions"
    assert int(heads) == ref[2] and int(bodies) == ref[3], (int(heads), int(bodies), ref[2], ref[3])
    assert np.allclose(float(ll2), ref[0], atol=2e-3, rtol=2e-3), (float(ll2), ref[0])
    assert np.allclose(float(lgeo), ref[1], atol=2e-3, rtol=2e-3), (float(lgeo), ref[1])
    print("KERNEL_OK")
</pallas_src>

<mosaic_0001>
module attributes {stable_mosaic.version = 11 : i64} {
  func.func @_rotation_loss_kernel(%arg0: i32, %arg1: memref<6x8x128xf32, #tpu.memory_space<vmem>>, %arg2: memref<6x8x128xf32, #tpu.memory_space<vmem>>, %arg3: memref<8x128xf32, #tpu.memory_space<vmem>>, %arg4: memref<1x8x128xf32, #tpu.memory_space<vmem>>, %arg5: memref<8x128xf32, #tpu.memory_space<vmem>>) attributes {dimension_semantics = [#tpu.dimension_semantics<arbitrary>], iteration_bounds = array<i64: 1>, scalar_prefetch = 0 : i64, scratch_operands = 1 : i64, tpu.core_type = #tpu.core_type<tc>, window_params = [{transform_indices = @transform_0, window_bounds = array<i64: 6, 8, 128>}, {transform_indices = @transform_1, window_bounds = array<i64: 6, 8, 128>}, {transform_indices = @transform_2, window_bounds = array<i64: 8, 128>}, {pipeline_mode = #tpu.pipeline_mode<synchronous>, transform_indices = @transform_3, window_bounds = array<i64: 1, 8, 128>}]} {
    %c0_i32 = arith.constant 0 : i32
    %0 = arith.cmpi eq, %arg0, %c0_i32 : i32
    %1 = arith.extui %0 : i1 to i32
    %c0_i32_0 = arith.constant 0 : i32
    %2 = arith.cmpi ne, %1, %c0_i32_0 : i32
    scf.if %2 {
      %cst_6 = arith.constant 0.000000e+00 : f32
      %14 = vector.broadcast %cst_6 : f32 to vector<8x128xf32>
      %c0_7 = arith.constant 0 : index
      %c0_8 = arith.constant 0 : index
      %15 = vector.load %arg5[%c0_7, %c0_8] : memref<8x128xf32, #tpu.memory_space<vmem>>, vector<8x128xf32>
      tpu.vector_store %arg5[%c0_7, %c0_8], %14 {strides = array<i32>} : memref<8x128xf32, #tpu.memory_space<vmem>>, vector<8x128xf32>,
    } else {
    }
    %c0 = arith.constant 0 : index
    %c0_1 = arith.constant 0 : index
    %3 = vector.load %arg3[%c0, %c0_1] : memref<8x128xf32, #tpu.memory_space<vmem>>, vector<8x128xf32>
    %4 = vector.shape_cast %3 : vector<8x128xf32> to vector<1x8x128xf32>
    %cst = arith.constant dense<0xFF800000> : vector<1xf32>
    %5 = vector.multi_reduction <maximumf>, %4, %cst [1, 2] : vector<1x8x128xf32> to vector<1xf32>
    %6 = vector.shape_cast %5 : vector<1xf32> to vector<1x1x1xf32>
    %7 = vector.extract %6[0, 0, 0] : f32 from vector<1x1x1xf32>
    %cst_2 = arith.constant -0.405465096 : f32
    %8 = arith.cmpf ogt, %7, %cst_2 : f32
    %9 = arith.extui %8 : i1 to i32
    %c0_i32_3 = arith.constant 0 : i32
    %10 = arith.cmpi ne, %9, %c0_i32_3 : i32
    scf.if %10 {
      %cst_6 = arith.constant -0.405465096 : f32
      %14 = vector.broadcast %cst_6 : f32 to vector<8x128xf32>
      %15 = arith.cmpf ogt, %3, %14 : vector<8x128xf32>
      %16 = arith.extui %15 : vector<8x128xi1> to vector<8x128xi32>
      %17 = arith.sitofp %16 : vector<8x128xi32> to vector<8x128xf32>
      %c0_7 = arith.constant 0 : index
      %c0_8 = arith.constant 0 : index
      %c0_9 = arith.constant 0 : index
      %18 = vector.load %arg1[%c0_7, %c0_8, %c0_9] : memref<6x8x128xf32, #tpu.memory_space<vmem>>, vector<6x8x128xf32>
      %cst_10 = arith.constant 5.000000e-01 : f32
      %19 = vector.broadcast %cst_10 : f32 to vector<6x8x128xf32>
      %20 = arith.mulf %18, %19 : vector<6x8x128xf32>
      %21 = math.tanh %20 : vector<6x8x128xf32>
      %c0_11 = arith.constant 0 : index
      %c0_12 = arith.constant 0 : index
      %c0_13 = arith.constant 0 : index
      %22 = vector.load %arg2[%c0_11, %c0_12, %c0_13] : memref<6x8x128xf32, #tpu.memory_space<vmem>>, vector<6x8x128xf32>
      %cst_14 = arith.constant 5.000000e-01 : f32
      %23 = vector.broadcast %cst_14 : f32 to vector<6x8x128xf32>
      %24 = arith.subf %22, %23 : vector<6x8x128xf32>
      %cst_15 = arith.constant 2.000000e+00 : f32
      %25 = vector.broadcast %cst_15 : f32 to vector<6x8x128xf32>
      %26 = arith.mulf %24, %25 : vector<6x8x128xf32>
      %27 = vector.extract_strided_slice %21 {offsets = [0, 0, 0], sizes = [1, 8, 128], strides = [1, 1, 1]} : vector<6x8x128xf32> to vector<1x8x128xf32>
      %28 = vector.shape_cast %27 : vector<1x8x128xf32> to vector<8x128xf32>
      %29 = vector.extract_strided_slice %21 {offsets = [1, 0, 0], sizes = [1, 8, 128], strides = [1, 1, 1]} : vector<6x8x128xf32> to vector<1x8x128xf32>
      %30 = vector.shape_cast %29 : vector<1x8x128xf32> to vector<8x128xf32>
      %31 = vector.extract_strided_slice %21 {offsets = [2, 0, 0], sizes = [1, 8, 128], strides = [1, 1, 1]} : vector<6x8x128xf32> to vector<1x8x128xf32>
      %32 = vector.shape_cast %31 : vector<1x8x128xf32> to vector<8x128xf32>
      %33 = vector.extract_strided_slice %21 {offsets = [3, 0, 0], sizes = [1, 8, 128], strides = [1, 1, 1]} : vector<6x8x128xf32> to vector<1x8x128xf32>
      %34 = vector.shape_cast %33 : vector<1x8x128xf32> to vector<8x128xf32>
      %35 = vector.extract_strided_slice %21 {offsets = [4, 0, 0], sizes = [1, 8, 128], strides = [1, 1, 1]} : vector<6x8x128xf32> to vector<1x8x128xf32>
      %36 = vector.shape_cast %35 : vector<1x8x128xf32> to vector<8x128xf32>
      %37 = vector.extract_strided_slice %21 {offsets = [5, 0, 0], sizes = [1, 8, 128], strides = [1, 1, 1]} : vector<6x8x128xf32> to vector<1x8x128xf32>
      %38 = vector.shape_cast %37 : vector<1x8x128xf32> to vector<8x128xf32>
      %39 = arith.mulf %28, %28 : vector<8x128xf32>
      %40 = arith.mulf %30, %30 : vector<8x128xf32>
      %41 = arith.addf %39, %40 : vector<8x128xf32>
      %42 = arith.mulf %32, %32 : vector<8x128xf32>
      %43 = arith.addf %41, %42 : vector<8x128xf32>
      %cst_16 = arith.constant 1.000000e-24 : f32
      %44 = vector.broadcast %cst_16 : f32 to vector<8x128xf32>
      %45 = arith.maximumf %43, %44 : vector<8x128xf32>
      %46 = math.rsqrt %45 : vector<8x128xf32>
      %47 = arith.mulf %28, %46 : vector<8x128xf32>
      %48 = arith.mulf %30, %46 : vector<8x128xf32>
      %49 = arith.mulf %32, %46 : vector<8x128xf32>
      %50 = arith.mulf %47, %34 : vector<8x128xf32>
      %51 = arith.mulf %48, %36 : vector<8x128xf32>
      %52 = arith.addf %50, %51 : vector<8x128xf32>
      %53 = arith.mulf %49, %38 : vector<8x128xf32>
      %54 = arith.addf %52, %53 : vector<8x128xf32>
      %55 = arith.mulf %54, %47 : vector<8x128xf32>
      %56 = arith.subf %34, %55 : vector<8x128xf32>
      %57 = arith.mulf %54, %48 : vector<8x128xf32>
      %58 = arith.subf %36, %57 : vector<8x128xf32>
      %59 = arith.mulf %54, %49 : vector<8x128xf32>
      %60 = arith.subf %38, %59 : vector<8x128xf32>
      %61 = arith.mulf %56, %56 : vector<8x128xf32>
      %62 = arith.mulf %58, %58 : vector<8x128xf32>
      %63 = arith.addf %61, %62 : vector<8x128xf32>
      %64 = arith.mulf %60, %60 : vector<8x128xf32>
      %65 = arith.addf %63, %64 : vector<8x128xf32>
      %cst_17 = arith.constant 1.000000e-24 : f32
      %66 = vector.broadcast %cst_17 : f32 to vector<8x128xf32>
      %67 = arith.maximumf %65, %66 : vector<8x128xf32>
      %68 = math.rsqrt %67 : vector<8x128xf32>
      %69 = arith.mulf %56, %68 : vector<8x128xf32>
      %70 = arith.mulf %58, %68 : vector<8x128xf32>
      %71 = arith.mulf %60, %68 : vector<8x128xf32>
      %72 = arith.mulf %48, %71 : vector<8x128xf32>
      %73 = arith.mulf %49, %70 : vector<8x128xf32>
      %74 = arith.subf %72, %73 : vector<8x128xf32>
      %75 = arith.mulf %49, %69 : vector<8x128xf32>
      %76 = arith.mulf %47, %71 : vector<8x128xf32>
      %77 = arith.subf %75, %76 : vector<8x128xf32>
      %78 = arith.mulf %47, %70 : vector<8x128xf32>
      %79 = arith.mulf %48, %69 : vector<8x128xf32>
      %80 = arith.subf %78, %79 : vector<8x128xf32>
      %81 = vector.extract_strided_slice %26 {offsets = [0, 0, 0], sizes = [1, 8, 128], strides = [1, 1, 1]} : vector<6x8x128xf32> to vector<1x8x128xf32>
      %82 = vector.shape_cast %81 : vector<1x8x128xf32> to vector<8x128xf32>
      %83 = vector.extract_strided_slice %26 {offsets = [1, 0, 0], sizes = [1, 8, 128], strides = [1, 1, 1]} : vector<6x8x128xf32> to vector<1x8x128xf32>
      %84 = vector.shape_cast %83 : vector<1x8x128xf32> to vector<8x128xf32>
      %85 = vector.extract_strided_slice %26 {offsets = [2, 0, 0], sizes = [1, 8, 128], strides = [1, 1, 1]} : vector<6x8x128xf32> to vector<1x8x128xf32>
      %86 = vector.shape_cast %85 : vector<1x8x128xf32> to vector<8x128xf32>
      %87 = vector.extract_strided_slice %26 {offsets = [3, 0, 0], sizes = [1, 8, 128], strides = [1, 1, 1]} : vector<6x8x128xf32> to vector<1x8x128xf32>
      %88 = vector.shape_cast %87 : vector<1x8x128xf32> to vector<8x128xf32>
      %89 = vector.extract_strided_slice %26 {offsets = [4, 0, 0], sizes = [1, 8, 128], strides = [1, 1, 1]} : vector<6x8x128xf32> to vector<1x8x128xf32>
      %90 = vector.shape_cast %89 : vector<1x8x128xf32> to vector<8x128xf32>
      %91 = vector.extract_strided_slice %26 {offsets = [5, 0, 0], sizes = [1, 8, 128], strides = [1, 1, 1]} : vector<6x8x128xf32> to vector<1x8x128xf32>
      %92 = vector.shape_cast %91 : vector<1x8x128xf32> to vector<8x128xf32>
      %93 = arith.mulf %82, %82 : vector<8x128xf32>
      %94 = arith.mulf %84, %84 : vector<8x128xf32>
      %95 = arith.addf %93, %94 : vector<8x128xf32>
      %96 = arith.mulf %86, %86 : vector<8x128xf32>
      %97 = arith.addf %95, %96 : vector<8x128xf32>
      %cst_18 = arith.constant 1.000000e-24 : f32
      %98 = vector.broadcast %cst_18 : f32 to vector<8x128xf32>
      %99 = arith.maximumf %97, %98 : vector<8x128xf32>
      %100 = math.rsqrt %99 : vector<8x128xf32>
      %101 = arith.mulf %82, %100 : vector<8x128xf32>
      %102 = arith.mulf %84, %100 : vector<8x128xf32>
      %103 = arith.mulf %86, %100 : vector<8x128xf32>
      %104 = arith.mulf %101, %88 : vector<8x128xf32>
      %105 = arith.mulf %102, %90 : vector<8x128xf32>
      %106 = arith.addf %104, %105 : vector<8x128xf32>
      %107 = arith.mulf %103, %92 : vector<8x128xf32>
      %108 = arith.addf %106, %107 : vector<8x128xf32>
      %109 = arith.mulf %108, %101 : vector<8x128xf32>
      %110 = arith.subf %88, %109 : vector<8x128xf32>
      %111 = arith.mulf %108, %102 : vector<8x128xf32>
      %112 = arith.subf %90, %111 : vector<8x128xf32>
      %113 = arith.mulf %108, %103 : vector<8x128xf32>
      %114 = arith.subf %92, %113 : vector<8x128xf32>
      %115 = arith.mulf %110, %110 : vector<8x128xf32>
      %116 = arith.mulf %112, %112 : vector<8x128xf32>
      %117 = arith.addf %115, %116 : vector<8x128xf32>
      %118 = arith.mulf %114, %114 : vector<8x128xf32>
      %119 = arith.addf %117, %118 : vector<8x128xf32>
      %cst_19 = arith.constant 1.000000e-24 : f32
      %120 = vector.broadcast %cst_19 : f32 to vector<8x128xf32>
      %121 = arith.maximumf %119, %120 : vector<8x128xf32>
      %122 = math.rsqrt %121 : vector<8x128xf32>
      %123 = arith.mulf %110, %122 : vector<8x128xf32>
      %124 = arith.mulf %112, %122 : vector<8x128xf32>
      %125 = arith.mulf %114, %122 : vector<8x128xf32>
      %126 = arith.mulf %102, %125 : vector<8x128xf32>
      %127 = arith.mulf %103, %124 : vector<8x128xf32>
      %128 = arith.subf %126, %127 : vector<8x128xf32>
      %129 = arith.mulf %103, %123 : vector<8x128xf32>
      %130 = arith.mulf %101, %125 : vector<8x128xf32>
      %131 = arith.subf %129, %130 : vector<8x128xf32>
      %132 = arith.mulf %101, %124 : vector<8x128xf32>
      %133 = arith.mulf %102, %123 : vector<8x128xf32>
      %134 = arith.subf %132, %133 : vector<8x128xf32>
      %cst_20 = arith.constant 0.000000e+00 : f32
      %135 = vector.broadcast %cst_20 : f32 to vector<8x128xf32>
      %cst_21 = arith.constant 0.000000e+00 : f32
      %136 = vector.broadcast %cst_21 : f32 to vector<8x128xf32>
      %137 = arith.subf %47, %101 : vector<8x128xf32>
      %138 = arith.subf %48, %102 : vector<8x128xf32>
      %139 = arith.subf %49, %103 : vector<8x128xf32>
      %140 = arith.mulf %137, %137 : vector<8x128xf32>
      %141 = arith.mulf %138, %138 : vector<8x128xf32>
      %142 = arith.addf %140, %141 : vector<8x128xf32>
      %143 = arith.mulf %139, %139 : vector<8x128xf32>
      %144 = arith.addf %142, %143 : vector<8x128xf32>
      %145 = math.sqrt %144 : vector<8x128xf32>
      %146 = arith.addf %135, %145 : vector<8x128xf32>
      %147 = arith.mulf %47, %101 : vector<8x128xf32>
      %148 = arith.addf %136, %147 : vector<8x128xf32>
      %149 = arith.mulf %48, %102 : vector<8x128xf32>
      %150 = arith.addf %148, %149 : vector<8x128xf32>
      %151 = arith.mulf %49, %103 : vector<8x128xf32>
      %152 = arith.addf %150, %151 : vector<8x128xf32>
      %153 = arith.subf %69, %123 : vector<8x128xf32>
      %154 = arith.subf %70, %124 : vector<8x128xf32>
      %155 = arith.subf %71, %125 : vector<8x128xf32>
      %156 = arith.mulf %153, %153 : vector<8x128xf32>
      %157 = arith.mulf %154, %154 : vector<8x128xf32>
      %158 = arith.addf %156, %157 : vector<8x128xf32>
      %159 = arith.mulf %155, %155 : vector<8x128xf32>
      %160 = arith.addf %158, %159 : vector<8x128xf32>
      %161 = math.sqrt %160 : vector<8x128xf32>
      %162 = arith.addf %146, %161 : vector<8x128xf32>
      %163 = arith.mulf %69, %123 : vector<8x128xf32>
      %164 = arith.addf %152, %163 : vector<8x128xf32>
      %165 = arith.mulf %70, %124 : vector<8x128xf32>
      %166 = arith.addf %164, %165 : vector<8x128xf32>
      %167 = arith.mulf %71, %125 : vector<8x128xf32>
      %168 = arith.addf %166, %167 : vector<8x128xf32>
      %169 = arith.subf %74, %128 : vector<8x128xf32>
      %170 = arith.subf %77, %131 : vector<8x128xf32>
      %171 = arith.subf %80, %134 : vector<8x128xf32>
      %172 = arith.mulf %169, %169 : vector<8x128xf32>
      %173 = arith.mulf %170, %170 : vector<8x128xf32>
      %174 = arith.addf %172, %173 : vector<8x128xf32>
      %175 = arith.mulf %171, %171 : vector<8x128xf32>
      %176 = arith.addf %174, %175 : vector<8x128xf32>
      %177 = math.sqrt %176 : vector<8x128xf32>
      %178 = arith.addf %162, %177 : vector<8x128xf32>
      %179 = arith.mulf %74, %128 : vector<8x128xf32>
      %180 = arith.addf %168, %179 : vector<8x128xf32>
      %181 = arith.mulf %77, %131 : vector<8x128xf32>
      %182 = arith.addf %180, %181 : vector<8x128xf32>
      %183 = arith.mulf %80, %134 : vector<8x128xf32>
      %184 = arith.addf %182, %183 : vector<8x128xf32>
      %cst_22 = arith.constant 1.000000e+00 : f32
      %185 = vector.broadcast %cst_22 : f32 to vector<8x128xf32>
      %186 = arith.subf %184, %185 : vector<8x128xf32>
      %cst_23 = arith.constant 5.000000e-01 : f32
      %187 = vector.broadcast %cst_23 : f32 to vector<8x128xf32>
      %188 = arith.mulf %186, %187 : vector<8x128xf32>
      %cst_24 = arith.constant -0.99999988 : f32
      %cst_25 = arith.constant 0.99999988 : f32
      %189 = vector.broadcast %cst_24 : f32 to vector<8x128xf32>
      %190 = arith.maximumf %189, %188 : vector<8x128xf32>
      %191 = vector.broadcast %cst_25 : f32 to vector<8x128xf32>
      %192 = arith.minimumf %191, %190 : vector<8x128xf32>
      %193 = arith.mulf %192, %192 : vector<8x128xf32>
      %cst_26 = arith.constant 1.000000e+00 : f32
      %194 = vector.broadcast %cst_26 : f32 to vector<8x128xf32>
      %195 = arith.subf %194, %193 : vector<8x128xf32>
      %cst_27 = arith.constant 0.000000e+00 : f32
      %196 = vector.broadcast %cst_27 : f32 to vector<8x128xf32>
      %197 = arith.maximumf %195, %196 : vector<8x128xf32>
      %198 = math.sqrt %197 : vector<8x128xf32>
      %199 = math.atan2 %198, %192 : vector<8x128xf32>
      %c0_28 = arith.constant 0 : index
      %c0_29 = arith.constant 0 : index
      %200 = vector.load %arg5[%c0_28, %c0_29] : memref<8x128xf32, #tpu.memory_space<vmem>>, vector<1x128xf32>
      %201 = arith.mulf %17, %178 : vector<8x128xf32>
      %cst_30 = arith.constant dense<0.000000e+00> : vector<128xf32>
      %202 = vector.multi_reduction <add>, %201, %cst_30 [0] : vector<8x128xf32> to vector<128xf32>
      %203 = vector.shape_cast %202 : vector<128xf32> to vector<1x128xf32>
      %204 = arith.addf %200, %203 : vector<1x128xf32>
      %c0_31 = arith.constant 0 : index
      %c0_32 = arith.constant 0 : index
      %205 = vector.load %arg5[%c0_31, %c0_32] : memref<8x128xf32, #tpu.memory_space<vmem>>, vector<1x128xf32>
      tpu.vector_store %arg5[%c0_31, %c0_32], %204 {strides = array<i32>} : memref<8x128xf32, #tpu.memory_space<vmem>>, vector<1x128xf32>,
      %c1 = arith.constant 1 : index
      %c0_33 = arith.constant 0 : index
      %206 = vector.load %arg5[%c1, %c0_33] : memref<8x128xf32, #tpu.memory_space<vmem>>, vector<1x128xf32>
      %207 = arith.mulf %17, %199 : vector<8x128xf32>
      %cst_34 = arith.constant dense<0.000000e+00> : vector<128xf32>
      %208 = vector.multi_reduction <add>, %207, %cst_34 [0] : vector<8x128xf32> to vector<128xf32>
      %209 = vector.shape_cast %208 : vector<128xf32> to vector<1x128xf32>
      %210 = arith.addf %206, %209 : vector<1x128xf32>
      %c1_35 = arith.constant 1 : index
      %c0_36 = arith.constant 0 : index
      %211 = vector.load %arg5[%c1_35, %c0_36] : memref<8x128xf32, #tpu.memory_space<vmem>>, vector<1x128xf32>
      tpu.vector_store %arg5[%c1_35, %c0_36], %210 {strides = array<i32>} : memref<8x128xf32, #tpu.memory_space<vmem>>, vector<1x128xf32>,
      %c2 = arith.constant 2 : index
      %c0_37 = arith.constant 0 : index
      %212 = vector.load %arg5[%c2, %c0_37] : memref<8x128xf32, #tpu.memory_space<vmem>>, vector<1x128xf32>
      %cst_38 = arith.constant dense<0.000000e+00> : vector<128xf32>
      %213 = vector.multi_reduction <add>, %17, %cst_38 [0] : vector<8x128xf32> to vector<128xf32>
      %214 = vector.shape_cast %213 : vector<128xf32> to vector<1x128xf32>
      %215 = arith.addf %212, %214 : vector<1x128xf32>
      %c2_39 = arith.constant 2 : index
      %c0_40 = arith.constant 0 : index
      %216 = vector.load %arg5[%c2_39, %c0_40] : memref<8x128xf32, #tpu.memory_space<vmem>>, vector<1x128xf32>
      tpu.vector_store %arg5[%c2_39, %c0_40], %215 {strides = array<i32>} : memref<8x128xf32, #tpu.memory_space<vmem>>, vector<1x128xf32>,
    } else {
    }
    %c0_i32_4 = arith.constant 0 : i32
    %11 = arith.cmpi eq, %arg0, %c0_i32_4 : i32
    %12 = arith.extui %11 : i1 to i32
    %c0_i32_5 = arith.constant 0 : i32
    %13 = arith.cmpi ne, %12, %c0_i32_5 : i32
    scf.if %13 {
      %c0_6 = arith.constant 0 : index
      %c0_7 = arith.constant 0 : index
      %14 = vector.load %arg5[%c0_6, %c0_7] : memref<8x128xf32, #tpu.memory_space<vmem>>, vector<8x128xf32>
      %15 = vector.shape_cast %14 : vector<8x128xf32> to vector<1x8x128xf32>
      %c0_8 = arith.constant 0 : index
      %c0_9 = arith.constant 0 : index
      %c0_10 = arith.constant 0 : index
      %16 = vector.load %arg4[%c0_8, %c0_9, %c0_10] : memref<1x8x128xf32, #tpu.memory_space<vmem>>, vector<1x8x128xf32>
      tpu.vector_store %arg4[%c0_8, %c0_9, %c0_10], %15 {strides = array<i32>} : memref<1x8x128xf32, #tpu.memory_space<vmem>>, vector<1x8x128xf32>,
    } else {
    }
    return
  }
  func.func @transform_0(%arg0: i32) -> (i32, i32, i32) {
    %c0_i32 = arith.constant 0 : i32
    %c0_i32_0 = arith.constant 0 : i32
    %c0_i32_1 = arith.constant 0 : i32
    return %c0_i32, %arg0, %c0_i32_0 : i32, i32, i32
  }
  func.func @transform_1(%arg0: i32) -> (i32, i32, i32) {
    %c0_i32 = arith.constant 0 : i32
    %c0_i32_0 = arith.constant 0 : i32
    %c0_i32_1 = arith.constant 0 : i32
    return %c0_i32, %arg0, %c0_i32_0 : i32, i32, i32
  }
  func.func @transform_2(%arg0: i32) -> (i32, i32) {
    %c0_i32 = arith.constant 0 : i32
    %c0_i32_0 = arith.constant 0 : i32
    return %arg0, %c0_i32 : i32, i32
  }
  func.func @transform_3(%arg0: i32) -> (i32, i32, i32) {
    %c0_i32 = arith.constant 0 : i32
    %c0_i32_0 = arith.constant 0 : i32
    %c0_i32_1 = arith.constant 0 : i32
    %c0_i32_2 = arith.constant 0 : i32
    return %c0_i32, %c0_i32_0, %c0_i32_1 : i32, i32, i32
  }
}

</mosaic_0001>

<bundles_post_ra>
// kernel: tpu_custom_call.1
= control target key start
LH: loop header
LB: loop body
LE: loop exit
PB: predicated region body
PF: predicated region fallthrough
CT: control target
= control target key end

     0   :  { %8 = vsyncpa [#allocation4], 0  ;;  %s623_s0 = inlined_call_operand.hbm [shape: f32[6,8,128], index: 0, kind: input, shape index: {}]   ;;  %s624_s1 = inlined_call_operand.hbm [shape: f32[6,8,128], index: 1, kind: input, shape index: {}]   ;;  %s625_s2 = inlined_call_operand.hbm [shape: f32[8,128], index: 2, kind: input, shape index: {}]   ;;  %s626_s3 = inlined_call_operand.hbm [shape: f32[1,8,128], index: 3, kind: output, shape index: {}]  }
   0x1   :  { %9 = vsyncpa [#allocation7], 0 }
   0x2   :  { %10 = vsyncpa [#allocation5], 0  ;;  %s505_s12 = smov [#allocation6]   ;;  %s506_s14 = smov [#allocation3]  }
   0x3   :  { %s28_s13 = sshll.u32 %s505_s12, 4  ;;  %s16_s15 = sshll.u32 %s506_s14, 4  ;;  %s29_s13 = int_to_ptr.vmem [resolvable:$true] %s28_s13  ;;  %s17_s15 = int_to_ptr.vmem [resolvable:$true] %s16_s15 }
   0x4   :  { %s427_s16 = scalar_lea.vmem %s29_s13, 768  ;;  %p432_p1 = scmp.lt.s32.totalorder %s29_s13, %s29_s13 }
   0x5   :  { %p428_p0 = scmp.ne.s32.totalorder %s29_s13, %s427_s16  ;;  %p433_p2 = scmp.lt.s32.totalorder %s427_s16, %s427_s16 }
   0x7   :  { %p434_p3 = por %p433_p2, %p432_p1 }
   0x9   :  { %p435_p4 = pnand %p434_p3, %p428_p0 }
   0xb   :  { %438 = shalt.err (!%p435_p4)
}
   0xc   :  { %s507_s17 = smov 128   ;;  %s508_s18 = smov 8  }
   0xd   :  { %34 = dma.hbm_to_vmem [thread:$0]  %s624_s1, 768, %s29_s13, [#allocation7], %s507_s17, %s507_s17, %s508_s18  }
   0xe   :  { %s447_s21 = scalar_lea.vmem %s17_s15, 768  ;;  %p452_p6 = scmp.lt.s32.totalorder %s17_s15, %s17_s15 }
   0xf   :  { %p448_p5 = scmp.ne.s32.totalorder %s17_s15, %s447_s21  ;;  %p453_p7 = scmp.lt.s32.totalorder %s447_s21, %s447_s21 }
  0x11   :  { %p454_p8 = por %p453_p7, %p452_p6 }
  0x13   :  { %p455_p9 = pnand %p454_p8, %p448_p5 }
  0x15   :  { %458 = shalt.err (!%p455_p9)
}
  0x16   :  { %22 = dma.hbm_to_vmem [thread:$0]  %s623_s0, 768, %s17_s15, [#allocation4], %s507_s17, %s507_s17, %s508_s18  }
  0x17   :  { %s509_s24 = smov [#allocation8]  }
  0x18   :  { %s41_s25 = sshll.u32 %s509_s24, 4  ;;  %s42_s25 = int_to_ptr.vmem [resolvable:$true] %s41_s25 }
  0x19   :  { %s467_s26 = scalar_lea.vmem %s42_s25, 128  ;;  %p472_p11 = scmp.lt.s32.totalorder %s42_s25, %s42_s25 }
  0x1a   :  { %p468_p10 = scmp.ne.s32.totalorder %s42_s25, %s467_s26  ;;  %p473_p12 = scmp.lt.s32.totalorder %s467_s26, %s467_s26 }
  0x1c   :  { %p474_p13 = por %p473_p12, %p472_p11 }
  0x1e   :  { %p475_p0 = pnand %p474_p13, %p468_p10 }
  0x20   :  { %478 = shalt.err (!%p475_p0)
}
  0x21   :  { %44 = dma.hbm_to_vmem [thread:$0]  %s625_s2, 128, %s42_s25, [#allocation7]  }
  0x22   :  { %499 = dma.done.wait [#allocation4], 768  }
  0x23   :  { %500 = vsyncadd [#allocation4], 4294966528 }
  0x24   :  { %501 = dma.done.wait [#allocation7], 896  }
  0x25   :  { %502 = vsyncadd [#allocation7], 4294966400  ;;  %v510_v0 = vmov 0.0   ;;  %v543_v1 = vld [vmem:[#allocation8] sm:$0xff] }
  0x26   :  { %58 = vst [vmem:[#allocation2] sm:$0xff] %v510_v0  ;;  %60 = vmax.xlane.f32.xlu0 %v543_v1 }
  0xaf   :  { %v61_v2 = vpop.xlane.xlu0 %60 }
  0xb0   :  { %v62_v3 = vrot.slane %v61_v2, 4 }
  0xb2   :  { %v63_v4 = vmax.f32 %v61_v2, %v62_v3 }
  0xb4   :  { %v64_v5 = vrot.slane %v63_v4, 2 }
  0xb6   :  { %v65_v6 = vmax.f32 %v63_v4, %v64_v5 }
  0xb8   :  { %v66_v7 = vrot.slane %v65_v6, 1 }
  0xba   :  { %v67_v8 = vmax.f32 %v65_v6, %v66_v7 }
  0xbc   :  { %378 = vpush %v67_v8 }
  0xed   :  { %s379_s0 = spop %378 }
  0xee   :  { %p69_p1 = scmp.gt.f32.partialorder %s379_s0, -0.4054651 }
  0xef   :  { %v76_v9 = vld [vmem:[#allocation3] sm:$0xff] (%p69_p1)  ;;  %v77_v10 = vld [vmem:[#allocation3 + $0x8] sm:$0xff] (%p69_p1)  ;;  %v78_v11 = vld [vmem:[#allocation3 + $0x10] sm:$0xff] (%p69_p1)  ;;  %vm73_vm0 = vcmp.gt.f32.partialorder (%p69_p1), %v543_v1, -0.4054651 }
  0xf0   :  { %72 = sbr.rel (!%p69_p1) target bundleno = 447 (0x1bf), region = 33  ;;  %v82_v12 = vmul.f32 (%p69_p1), 0.5, %v76_v9  ;;  %v83_v13 = vmul.f32 (%p69_p1), 0.5, %v77_v10  ;;  %v84_v14 = vmul.f32 (%p69_p1), 0.5, %v78_v11  ;;  %v94_v15 = vld [vmem:[#allocation6] sm:$0xff] (%p69_p1)  ;;  %v95_v16 = vld [vmem:[#allocation6 + $0x8] sm:$0xff] (%p69_p1) }
  0xf1   :  { %v96_v17 = vld [vmem:[#allocation6 + $0x10] sm:$0xff] (%p69_p1)  ;;  %v370_v18 = vadd.f32 (%p69_p1), -0.5, %v94_v15  ;;  %v371_v19 = vadd.f32 (%p69_p1), -0.5, %v95_v16  ;;  %v79_v31 = vld [vmem:[#allocation3 + $0x18] sm:$0xff] (%p69_p1)  ;;  %v81_v36 = vld [vmem:[#allocation3 + $0x28] sm:$0xff] (%p69_p1) }
  0xf2   :  { %389 = vtanh.f32 (%p69_p1), %v82_v12  ;;  %v372_v20 = vadd.f32 (%p69_p1), -0.5, %v96_v17  ;;  %v80_v33 = vld [vmem:[#allocation3 + $0x20] sm:$0xff] (%p69_p1)  ;;  %v85_v38 = vmul.f32 (%p69_p1), 0.5, %v79_v31  ;;  %v97_v41 = vld [vmem:[#allocation6 + $0x18] sm:$0xff] (%p69_p1)  ;;  %v98_v42 = vld [vmem:[#allocation6 + $0x20] sm:$0xff] (%p69_p1)  ;;  %v87_v45 = vmul.f32 (%p69_p1), 0.5, %v81_v36 }
  0xf3   :  { %391 = vtanh.f32 (%p69_p1), %v83_v13  ;;  %v106_v21 = vmul.f32 (%p69_p1), 2.0, %v370_v18  ;;  %v107_v22 = vmul.f32 (%p69_p1), 2.0, %v371_v19  ;;  %v86_v40 = vmul.f32 (%p69_p1), 0.5, %v80_v33  ;;  %v99_v43 = vld [vmem:[#allocation6 + $0x28] sm:$0xff] (%p69_p1) }
  0xf4   :  { %393 = vtanh.f32 (%p69_p1), %v84_v14  ;;  %v108_v23 = vmul.f32 (%p69_p1), 2.0, %v372_v20  ;;  %v373_v47 = vadd.f32 (%p69_p1), -0.5, %v97_v41  ;;  %v374_v48 = vadd.f32 (%p69_p1), -0.5, %v98_v42 }
  0xf5   :  { %v152_v24 = vmul.f32 %v106_v21, %v106_v21  ;;  %v153_v25 = vmul.f32 %v107_v22, %v107_v22  ;;  %v375_v49 = vadd.f32 -0.5, %v99_v43  ;;  %v511_v42 = vmov 0.0  }
  0xf6   :  { %v155_v26 = vmul.f32 %v108_v23, %v108_v23  ;;  %v109_v51 = vmul.f32 2.0, %v373_v47  ;;  %v110_v52 = vmul.f32 2.0, %v374_v48  ;;  %v578_v43 = vsel %vm73_vm0, 1.0, %v511_v42 }
  0xf7   :  { %v154_v27 = vadd.f32 %v153_v25, %v152_v24  ;;  %v111_v53 = vmul.f32 2.0, %v375_v49 }
  0xf9   :  { %v156_v28 = vadd.f32 %v155_v26, %v154_v27 }
  0xfb   :  { %v157_v29 = vmax.f32 %v156_v28, 1e-24 }
  0xfd   :  { %395 = vrsqrt.f32 %v157_v29 }
  0xfe   :  { %397 = vtanh.f32 %v85_v38 }
  0xff   :  { %v390_v30 = vpop.eup %389  ;;  %399 = vtanh.f32 %v86_v40 }
 0x100   :  { %v392_v32 = vpop.eup %391  ;;  %v112_v34 = vmul.f32 %v390_v30, %v390_v30  ;;  %401 = vtanh.f32 %v87_v45 }
 0x101   :  { %v394_v35 = vpop.eup %393  ;;  %v113_v37 = vmul.f32 %v392_v32, %v392_v32 }
 0x102   :  { %v115_v39 = vmul.f32 %v394_v35, %v394_v35 }
 0x103   :  { %v114_v44 = vadd.f32 %v113_v37, %v112_v34 }
 0x105   :  { %v116_v46 = vadd.f32 %v115_v39, %v114_v44 }
 0x107   :  { %v117_v50 = vmax.f32 %v116_v46, 1e-24 }
 0x109   :  { %403 = vrsqrt.f32 %v117_v50  ;;  %v340_v50 = vrot.slane %v578_v43, 4 }
 0x10a   :  { %v396_v54 = vpop.eup %395 }
 0x10b   :  { %v546_v55 = vmul.f32 %v396_v54, %v106_v21  ;;  %v548_v56 = vmul.f32 %v396_v54, %v107_v22  ;;  %v550_v57 = vmul.f32 %v396_v54, %v108_v23  ;;  %v398_v63 = vpop.eup %397  ;;  %v341_v1 = vadd.f32 %v578_v43, %v340_v50 }
 0x10c   :  { %v400_v0 = vpop.eup %399 }
 0x10d   :  { %v162_v58 = vmul.f32 %v546_v55, %v109_v51  ;;  %v163_v59 = vmul.f32 %v548_v56, %v110_v52  ;;  %v165_v60 = vmul.f32 %v550_v57, %v111_v53  ;;  %v402_v5 = vpop.eup %401 }
 0x10f   :  { %v164_v61 = vadd.f32 %v163_v59, %v162_v58 }
 0x111   :  { %v166_v62 = vadd.f32 %v165_v60, %v164_v61  ;;  %v342_v60 = vrot.slane %v341_v1, 2 }
 0x113   :  { %v167_v2 = vmul.f32 %v166_v62, %v546_v55  ;;  %v169_v3 = vmul.f32 %v166_v62, %v548_v56  ;;  %v171_v4 = vmul.f32 %v166_v62, %v550_v57 }
 0x115   :  { %v168_v7 = vsub.f32 %v109_v51, %v167_v2  ;;  %v170_v8 = vsub.f32 %v110_v52, %v169_v3  ;;  %v172_v9 = vsub.f32 %v111_v53, %v171_v4  ;;  %v343_v2 = vadd.f32 %v342_v60, %v341_v1 }
 0x116   :  { %v404_v6 = vpop.eup %403 }
 0x117   :  { %v558_v10 = vmul.f32 %v404_v6, %v390_v30  ;;  %v560_v11 = vmul.f32 %v404_v6, %v392_v32  ;;  %v562_v12 = vmul.f32 %v404_v6, %v394_v35  ;;  %v173_v13 = vmul.f32 %v168_v7, %v168_v7 }
 0x118   :  { %v174_v14 = vmul.f32 %v170_v8, %v170_v8  ;;  %v176_v15 = vmul.f32 %v172_v9, %v172_v9 }
 0x119   :  { %v122_v16 = vmul.f32 %v398_v63, %v558_v10  ;;  %v123_v17 = vmul.f32 %v400_v0, %v560_v11  ;;  %v125_v18 = vmul.f32 %v402_v5, %v562_v12  ;;  %v192_v36 = vsub.f32 %v558_v10, %v546_v55 }
 0x11a   :  { %v175_v19 = vadd.f32 %v174_v14, %v173_v13  ;;  %v193_v37 = vsub.f32 %v560_v11, %v548_v56  ;;  %v194_v38 = vsub.f32 %v562_v12, %v550_v57  ;;  %v208_v45 = vmul.f32 %v546_v55, %v558_v10 }
 0x11b   :  { %v124_v20 = vadd.f32 %v123_v17, %v122_v16  ;;  %v195_v39 = vmul.f32 %v192_v36, %v192_v36  ;;  %v210_v46 = vmul.f32 %v548_v56, %v560_v11  ;;  %v212_v53 = vmul.f32 %v550_v57, %v562_v12 }
 0x11c   :  { %v177_v21 = vadd.f32 %v176_v15, %v175_v19  ;;  %v196_v40 = vmul.f32 %v193_v37, %v193_v37  ;;  %v198_v44 = vmul.f32 %v194_v38, %v194_v38  ;;  %v344_v14 = vrot.slane %v343_v2, 1  ;;  %v339_v37 = vld [vmem:[#allocation2 + $0x2] sm:$0x1] }
 0x11d   :  { %v126_v22 = vadd.f32 %v125_v18, %v124_v20  ;;  %v211_v52 = vadd.f32 %v210_v46, %v208_v45 }
 0x11e   :  { %v178_v26 = vmax.f32 %v177_v21, 1e-24  ;;  %v197_v49 = vadd.f32 %v196_v40, %v195_v39  ;;  %v345_v38 = vadd.f32 %v344_v14, %v343_v2 }
 0x11f   :  { %v127_v23 = vmul.f32 %v126_v22, %v558_v10  ;;  %v129_v24 = vmul.f32 %v126_v22, %v560_v11  ;;  %v131_v25 = vmul.f32 %v126_v22, %v562_v12  ;;  %v213_v4 = vadd.f32 %v212_v53, %v211_v52 }
 0x120   :  { %405 = vrsqrt.f32 %v178_v26  ;;  %v590_v59 = vadd.f32 %v198_v44, %v197_v49  ;;  %v346_v46 = vadd.f32 %v345_v38, %v339_v37 }
 0x121   :  { %v128_v27 = vsub.f32 %v398_v63, %v127_v23  ;;  %v130_v28 = vsub.f32 %v400_v0, %v129_v24  ;;  %v132_v29 = vsub.f32 %v402_v5, %v131_v25 }
 0x122   :  { %347 = vst [vmem:[#allocation2 + $0x2] sm:$0x1] %v346_v46  ;;  %vm202_vm1 = vcmp.eq.f32.partialorder %v590_v59, inf  ;;  %vm204_vm2 = vcmp.eq.f32.partialorder %v590_v59, 0.0 }
 0x123   :  { %v133_v30 = vmul.f32 %v128_v27, %v128_v27  ;;  %v134_v31 = vmul.f32 %v130_v28, %v130_v28  ;;  %v136_v32 = vmul.f32 %v132_v29, %v132_v29 }
 0x125   :  { %v135_v33 = vadd.f32 %v134_v31, %v133_v30 }
 0x127   :  { %v137_v34 = vadd.f32 %v136_v32, %v135_v33 }
 0x129   :  { %v138_v35 = vmax.f32 %v137_v34, 1e-24 }
 0x12b   :  { %407 = vrsqrt.f32 %v138_v35 }
 0x12c   :  { %409 = vrsqrt.f32 %v590_v59 }
 0x12d   :  { %v406_v41 = vpop.eup %405 }
 0x12e   :  { %v181_v47 = vmul.f32 %v406_v41, %v170_v8  ;;  %v182_v48 = vmul.f32 %v406_v41, %v172_v9  ;;  %v180_v51 = vmul.f32 %v406_v41, %v168_v7 }
 0x130   :  { %v183_v54 = vmul.f32 %v182_v48, %v548_v56  ;;  %v184_v58 = vmul.f32 %v181_v47, %v550_v57  ;;  %v186_v61 = vmul.f32 %v180_v51, %v550_v57  ;;  %v187_v62 = vmul.f32 %v182_v48, %v546_v55 }
 0x131   :  { %v189_v63 = vmul.f32 %v181_v47, %v546_v55  ;;  %v190_v0 = vmul.f32 %v180_v51, %v548_v56 }
 0x132   :  { %v185_v8 = vsub.f32 %v183_v54, %v184_v58  ;;  %v188_v9 = vsub.f32 %v186_v61, %v187_v62  ;;  %v205_v54 = vand.u32 2147483648, %v590_v59 }
 0x133   :  { %v191_v13 = vsub.f32 %v189_v63, %v190_v0 }
 0x138   :  { %v408_v3 = vpop.eup %407 }
 0x139   :  { %v140_v5 = vmul.f32 %v408_v3, %v128_v27  ;;  %v141_v6 = vmul.f32 %v408_v3, %v130_v28  ;;  %v142_v7 = vmul.f32 %v408_v3, %v132_v29 }
 0x13b   :  { %v143_v57 = vmul.f32 %v142_v7, %v560_v11  ;;  %v144_v15 = vmul.f32 %v141_v6, %v562_v12  ;;  %v146_v55 = vmul.f32 %v140_v5, %v562_v12  ;;  %v147_v56 = vmul.f32 %v142_v7, %v558_v10 }
 0x13c   :  { %v149_v16 = vmul.f32 %v141_v6, %v558_v10  ;;  %v150_v17 = vmul.f32 %v140_v5, %v560_v11  ;;  %v214_v18 = vsub.f32 %v140_v5, %v180_v51  ;;  %v215_v19 = vsub.f32 %v141_v6, %v181_v47 }
 0x13d   :  { %v145_v20 = vsub.f32 %v143_v57, %v144_v15  ;;  %v148_v21 = vsub.f32 %v146_v55, %v147_v56  ;;  %v216_v22 = vsub.f32 %v142_v7, %v182_v48  ;;  %v230_v23 = vmul.f32 %v180_v51, %v140_v5 }
 0x13e   :  { %v151_v24 = vsub.f32 %v149_v16, %v150_v17  ;;  %v217_v25 = vmul.f32 %v214_v18, %v214_v18  ;;  %v218_v26 = vmul.f32 %v215_v19, %v215_v19  ;;  %v232_v27 = vmul.f32 %v181_v47, %v141_v6  ;;  %v410_v47 = vpop.eup %409 }
 0x13f   :  { %v220_v28 = vmul.f32 %v216_v22, %v216_v22  ;;  %v231_v29 = vadd.f32 %v230_v23, %v213_v4  ;;  %v234_v30 = vmul.f32 %v182_v48, %v142_v7  ;;  %v236_v12 = vsub.f32 %v145_v20, %v185_v8 }
 0x140   :  { %v219_v31 = vadd.f32 %v218_v26, %v217_v25  ;;  %v237_v32 = vsub.f32 %v148_v21, %v188_v9  ;;  %v238_v33 = vsub.f32 %v151_v24, %v191_v13  ;;  %v252_v11 = vmul.f32 %v185_v8, %v145_v20 }
 0x141   :  { %v233_v10 = vadd.f32 %v232_v27, %v231_v29  ;;  %v239_v34 = vmul.f32 %v236_v12, %v236_v12  ;;  %v254_v41 = vmul.f32 %v188_v9, %v148_v21  ;;  %v256_v48 = vmul.f32 %v191_v13, %v151_v24  ;;  %v319_v24 = vld [vmem:[#allocation2] sm:$0x1] }
 0x142   :  { %v221_v35 = vadd.f32 %v220_v28, %v219_v31  ;;  %v240_v36 = vmul.f32 %v237_v32, %v237_v32  ;;  %v242_v40 = vmul.f32 %v238_v33, %v238_v33  ;;  %v201_v52 = vmul.f32 %v410_v47, %v590_v59 }
 0x143   :  { %v235_v39 = vadd.f32 %v234_v30, %v233_v10 }
 0x144   :  { %411 = vrsqrt.f32 %v221_v35  ;;  %v241_v44 = vadd.f32 %v240_v36, %v239_v34  ;;  %v203_v61 = vsel %vm202_vm1, %v590_v59, %v201_v52  ;;  %vm224_vm3 = vcmp.eq.f32.partialorder %v221_v35, inf }
 0x145   :  { %v253_v45 = vadd.f32 %v252_v11, %v235_v39  ;;  %v227_v62 = vand.u32 2147483648, %v221_v35  ;;  %vm226_vm4 = vcmp.eq.f32.partialorder %v221_v35, 0.0  ;;  %v206_v2 = vsel %vm204_vm2, %v205_v54, %v203_v61 }
 0x146   :  { %v243_v49 = vadd.f32 %v242_v40, %v241_v44  ;;  %v512_v54 = vmov 0.7853982  }
 0x147   :  { %v255_v50 = vadd.f32 %v254_v41, %v253_v45 }
 0x148   :  { %413 = vrsqrt.f32 %v243_v49  ;;  %vm246_vm5 = vcmp.eq.f32.partialorder %v243_v49, inf  ;;  %v249_v7 = vand.u32 2147483648, %v243_v49  ;;  %vm248_vm6 = vcmp.eq.f32.partialorder %v243_v49, 0.0 }
 0x149   :  { %v257_v1 = vadd.f32 %v256_v48, %v255_v50 }
 0x14b   :  { %v376_v51 = vadd.f32 -1.0, %v257_v1 }
 0x14d   :  { %v259_v53 = vmul.f32 0.5, %v376_v51 }
 0x14f   :  { %v606_v58 = vclamps-f32 %v259_v53, 0.9999999 }
 0x151   :  { %v412_v60 = vpop.eup %411  ;;  %v262_v0 = vmul.f32 %v606_v58, %v606_v58  ;;  %v272_v23 = vand.u32 2147483647, %v606_v58  ;;  %vm302_vm10 = vcmp.lt.s32.totalorder %v606_v58, 0  ;;  %vm306_vm11 = vcmp.ne.f32.partialorder %v606_v58, %v606_v58 }
 0x152   :  { %v223_v63 = vmul.f32 %v412_v60, %v221_v35  ;;  %vm299_vm13 = vcmp.lt.f32.partialorder %v606_v58, 0.0  ;;  %v303_v52 = vsel %vm302_vm10, 3.1415927, %v511_v42  ;;  %v329_v42 = vld [vmem:[#allocation2 + $0x1] sm:$0x1] }
 0x153   :  { %v263_v4 = vsub.f32 1.0, %v262_v0  ;;  %vm312_vm14 = vcmp.eq.s32.totalorder %v272_v23, inf  ;;  %v311_v60 = vsel %vm299_vm13, 2.3561945, %v512_v54 }
 0x154   :  { %v225_v3 = vsel %vm224_vm3, %v221_v35, %v223_v63 }
 0x155   :  { %v228_v5 = vsel %vm226_vm4, %v227_v62, %v225_v3  ;;  %v414_v6 = vpop.eup %413  ;;  %v264_v8 = vmax.f32 %v263_v4, 0.0 }
 0x156   :  { %v229_v9 = vadd.f32 %v228_v5, %v206_v2  ;;  %v245_v13 = vmul.f32 %v414_v6, %v243_v49 }
 0x157   :  { %415 = vrsqrt.f32 %v264_v8  ;;  %vm267_vm7 = vcmp.eq.f32.partialorder %v264_v8, inf  ;;  %v270_v18 = vand.u32 2147483648, %v264_v8  ;;  %vm269_vm8 = vcmp.eq.f32.partialorder %v264_v8, 0.0 }
 0x158   :  { %v247_v59 = vsel %vm246_vm5, %v243_v49, %v245_v13 }
 0x159   :  { %v250_v14 = vsel %vm248_vm6, %v249_v7, %v247_v59 }
 0x15a   :  { %v251_v57 = vadd.f32 %v250_v14, %v229_v9 }
 0x15c   :  { %v320_v15 = vmul.f32 %v578_v43, %v251_v57 }
 0x15e   :  { %v321_v55 = vrot.slane %v320_v15, 4 }
 0x160   :  { %v322_v56 = vadd.f32 %v321_v55, %v320_v15 }
 0x162   :  { %v323_v16 = vrot.slane %v322_v56, 2 }
 0x164   :  { %v416_v17 = vpop.eup %415  ;;  %v324_v19 = vadd.f32 %v323_v16, %v322_v56 }
 0x165   :  { %v266_v20 = vmul.f32 %v416_v17, %v264_v8 }
 0x166   :  { %v325_v21 = vrot.slane %v324_v19, 1 }
 0x167   :  { %v268_v22 = vsel %vm267_vm7, %v264_v8, %v266_v20 }
 0x168   :  { %v271_v25 = vsel %vm269_vm8, %v270_v18, %v268_v22  ;;  %v326_v26 = vadd.f32 %v325_v21, %v324_v19 }
 0x169   :  { %v273_v27 = vand.u32 2147483647, %v271_v25  ;;  %vm307_vm12 = vcmp.ne.f32.partialorder %v271_v25, %v271_v25  ;;  %vm304_vm0 = vcmp.eq.f32.partialorder %v271_v25, 0.0  ;;  %v317_v63 = vand.u32 2147483648, %v271_v25 }
 0x16a   :  { %v327_v28 = vadd.f32 %v326_v26, %v319_v24  ;;  %vm308_vm1 = vmor %vm306_vm11, %vm307_vm12 }
 0x16b   :  { %v275_v29 = vmax.f32 %v272_v23, %v273_v27  ;;  %v274_v30 = vmin.f32 %v272_v23, %v273_v27  ;;  %vm296_vm9 = vcmp.gt.f32.partialorder %v273_v27, %v272_v23  ;;  %vm313_vm15 = vcmp.eq.s32.totalorder %v273_v27, inf }
 0x16c   :  { %328 = vst [vmem:[#allocation2] sm:$0x1] %v327_v28  ;;  %vm314_vm2 = vmand %vm312_vm14, %vm313_vm15 }
 0x16d   :  { %417 = vrcp.f32 %v275_v29 }
 0x17a   :  { %v418_v12 = vpop.eup %417 }
 0x17b   :  { %v277_v31 = vmul.f32 %v418_v12, %v274_v30 }
 0x17d   :  { %v278_v32 = vmul.f32 %v277_v31, %v277_v31 }
 0x17f   :  { %v279_v33 = vmul.f32 0.002785687, %v278_v32 }
 0x181   :  { %v280_v10 = vadd.f32 -0.015866, %v279_v33 }
 0x183   :  { %v281_v34 = vmul.f32 %v280_v10, %v278_v32 }
 0x185   :  { %v282_v11 = vadd.f32 0.04247222, %v281_v34 }
 0x187   :  { %v283_v35 = vmul.f32 %v282_v11, %v278_v32 }
 0x189   :  { %v284_v36 = vadd.f32 -0.074975304, %v283_v35 }
 0x18b   :  { %v285_v37 = vmul.f32 %v284_v36, %v278_v32 }
 0x18d   :  { %v286_v38 = vadd.f32 0.1064488, %v285_v37 }
 0x18f   :  { %v287_v39 = vmul.f32 %v286_v38, %v278_v32 }
 0x191   :  { %v288_v40 = vadd.f32 -0.14207031, %v287_v39 }
 0x193   :  { %v289_v41 = vmul.f32 %v288_v40, %v278_v32 }
 0x195   :  { %v290_v44 = vadd.f32 0.19993454, %v289_v41 }
 0x197   :  { %v291_v45 = vmul.f32 %v290_v44, %v278_v32 }
 0x199   :  { %v292_v46 = vadd.f32 -0.33333147, %v291_v45 }
 0x19b   :  { %v293_v47 = vmul.f32 %v292_v46, %v278_v32 }
 0x19d   :  { %v294_v48 = vmul.f32 %v293_v47, %v277_v31 }
 0x19f   :  { %v295_v49 = vadd.f32 %v294_v48, %v277_v31 }
 0x1a1   :  { %v297_v50 = vsub.f32 1.5707964, %v295_v49 }
 0x1a3   :  { %v298_v1 = vsel %vm296_vm9, %v297_v50, %v295_v49 }
 0x1a4   :  { %v300_v51 = vsub.f32 3.1415927, %v298_v1 }
 0x1a6   :  { %v301_v53 = vsel %vm299_vm13, %v300_v51, %v298_v1 }
 0x1a7   :  { %v305_v61 = vsel %vm304_vm0, %v303_v52, %v301_v53 }
 0x1a8   :  { %v309_v62 = vsel %vm308_vm1, nan, %v305_v61 }
 0x1a9   :  { %v315_v0 = vsel %vm314_vm2, %v311_v60, %v309_v62 }
 0x1aa   :  { %v316_v2 = vand.u32 2147483647, %v315_v0 }
 0x1ac   :  { %v318_v3 = vor.u32 %v317_v63, %v316_v2 }
 0x1ae   :  { %v330_v4 = vmul.f32 %v578_v43, %v318_v3 }
 0x1b0   :  { %v331_v58 = vrot.slane %v330_v4, 4 }
 0x1b2   :  { %v332_v5 = vadd.f32 %v331_v58, %v330_v4 }
 0x1b4   :  { %v333_v6 = vrot.slane %v332_v5, 2 }
 0x1b6   :  { %v334_v7 = vadd.f32 %v333_v6, %v332_v5 }
 0x1b8   :  { %v335_v8 = vrot.slane %v334_v7, 1 }
 0x1ba   :  { %v336_v9 = vadd.f32 %v335_v8, %v334_v7 }
 0x1bc   :  { %v337_v13 = vadd.f32 %v336_v9, %v329_v42 }
 0x1be   :  { %338 = vst [vmem:[#allocation2 + $0x1] sm:$0x1] %v337_v13 }
 0x1bf PF:  { %s513_s2 = smov [#allocation9]  }
 0x1c0   :  { %s359_s28 = sshll.u32 %s513_s2, 4  ;;  %s360_s28 = int_to_ptr.vmem [resolvable:$true] %s359_s28 }
 0x1c1   :  { %s479_s29 = scalar_lea.vmem %s360_s28, 128  ;;  %p484_p3 = scmp.lt.s32.totalorder %s360_s28, %s360_s28 }
 0x1c2   :  { %p480_p2 = scmp.ne.s32.totalorder %s360_s28, %s479_s29  ;;  %p485_p4 = scmp.lt.s32.totalorder %s479_s29, %s479_s29 }
 0x1c4   :  { %p486_p5 = por %p485_p4, %p484_p3 }
 0x1c5   :  { %v351_v59 = vld [vmem:[#allocation2] sm:$0xff] }
 0x1c6   :  { %352 = vst [vmem:[#allocation9] sm:$0xff] %v351_v59  ;;  %p487_p6 = pnand %p486_p5, %p480_p2 }
 0x1c8   :  { %490 = shalt.err (!%p487_p6)
}
 0x1c9   :  { %362 = dma.vmem_to_hbm [thread:$0]  %s360_s28, 128, %s626_s3, [#allocation5]  }
 0x1ca   :  { %503 = dma.done.wait [#allocation5], 128  }
 0x1cb   :  { %504 = vsyncadd [#allocation5], 4294967168 }
 0x1cc   :  { %366 = vsyncpa [#allocation4], 1 }
 0x1cd   :  { %367 = vsyncpa [#allocation7], 1 }
 0x1ce   :  { %368 = vsyncpa [#allocation5], 1 }

</bundles_post_ra>
